<compile_context>
chip_gen: v7x
topology: tpu7x:2x2x1
jax: 0.10.0
libtpu: 0.0.40
codegen_flags: <defaults>
</compile_context>

<pallas_src>
import jax
import jax.numpy as jnp
from jax.experimental import pallas as pl
from jax.experimental.pallas import tpu as pltpu


def _round_up(a: int, m: int) -> int:
    return ((a + m - 1) // m) * m


def _cdiv(a: int, b: int) -> int:
    return (a + b - 1) // b


def _make_conv1x1_sigmoid_kernel(cin: int, cout: int):
    def kernel(x_ref, w_ref, b_ref, o_ref):
        # x_ref: (cin, TILE_R, C_COL) VMEM   w_ref: (cout, cin) SMEM
        # b_ref: (cout,) SMEM                o_ref: (cout, TILE_R, C_COL) VMEM
        for co in range(cout):  # static unroll (tiny cout)
            acc = w_ref[co, 0] * x_ref[0] + b_ref[co]
            for ci in range(1, cin):  # static unroll (tiny cin) -> VPU FMAs
                acc = acc + w_ref[co, ci] * x_ref[ci]
            # sigmoid(z) = 0.5*tanh(0.5*z) + 0.5: one EUP op, saturating (no inf).
            o_ref[co] = (0.5 * jnp.tanh(0.5 * acc) + 0.5).astype(o_ref.dtype)

    return kernel


def forest_gap_forward(x_nchw, weight, bias, *, col_width: int = 512,
                       tile_rows: int = 512):
    """x_nchw: (B, Cin, H, W) f32; weight: (Cout, Cin) f32; bias: (Cout,) f32."""
    B, Cin, H, W = x_nchw.shape
    Cout, Cin_w = weight.shape
    assert Cin_w == Cin, "weight must be (Cout, Cin)"

    S = H * W
    # Lane axis width: multiple of 128, capped at col_width.
    c_col = min(col_width, _round_up(S, 128))
    s_pad = _round_up(S, c_col)

    # Contiguous (free) reshape; pad only up to the small column granularity.
    x3 = x_nchw.reshape(B, Cin, S)
    if s_pad != S:
        x3 = jnp.pad(x3, ((0, 0), (0, 0), (0, s_pad - S)))
    R = s_pad // c_col
    x4 = x3.reshape(B, Cin, R, c_col)

    # Sublane-dense row tile: multiple of 8, or the full R for small inputs.
    tile_r = R if R <= tile_rows else tile_rows
    num_r_tiles = _cdiv(R, tile_r)
    # Keep >= 2 grid steps when possible so both v7x TensorCores stay busy.
    if B * num_r_tiles < 2 and R >= 16:
        tile_r = _round_up(_cdiv(R, 2), 8)
        num_r_tiles = _cdiv(R, tile_r)

    grid = (B, num_r_tiles)
    itemsize = jnp.dtype(x_nchw.dtype).itemsize
    kernel = _make_conv1x1_sigmoid_kernel(Cin, Cout)

    out4 = pl.pallas_call(
        kernel,
        out_shape=jax.ShapeDtypeStruct((B, Cout, R, c_col), x_nchw.dtype),
        grid=grid,
        in_specs=[
            # Batch dim squeezed; (TILE_R, C_COL) spatial tile is (8k, 128m)-dense.
            pl.BlockSpec((None, Cin, tile_r, c_col), lambda b, r: (b, 0, r, 0)),
            # Parameter scalars -> SMEM (no padded VMEM vreg tiles).
            pl.BlockSpec(memory_space=pltpu.MemorySpace.SMEM),
            pl.BlockSpec(memory_space=pltpu.MemorySpace.SMEM),
        ],
        out_specs=pl.BlockSpec((None, Cout, tile_r, c_col),
                               lambda b, r: (b, 0, r, 0)),
        compiler_params=pltpu.CompilerParams(
            dimension_semantics=("parallel", "parallel"),
        ),
        cost_estimate=pl.CostEstimate(
            flops=2 * B * s_pad * Cin * Cout,
            transcendentals=B * s_pad * Cout,
            bytes_accessed=(B * Cin * s_pad + B * Cout * s_pad) * itemsize
            + (weight.size + bias.size) * 4,
        ),
    )(x4, weight, bias)

    # Drop the (small) spatial padding and restore (B, Cout, H, W). No transpose.
    out3 = out4.reshape(B, Cout, s_pad)
    if s_pad != S:
        out3 = out3[:, :, :S]
    return out3.reshape(B, Cout, H, W)


def init_params(key, in_channels, out_channels):
    # Deterministic init mirroring Conv2d(in, out, kernel_size=1): weight (Cout, Cin).
    kw, kb = jax.random.split(key)
    bound = 1.0 / (in_channels ** 0.5)
    weight = jax.random.uniform(
        kw, (out_channels, in_channels), jnp.float32, -bound, bound
    )
    bias = jax.random.uniform(kb, (out_channels,), jnp.float32, -bound, bound)
    return weight, bias


def _reference(x, weight, bias):
    Cout = weight.shape[0]
    return jax.nn.sigmoid(
        jnp.einsum("bchw,oc->bohw", x, weight) + bias.reshape(1, Cout, 1, 1)
    )


if __name__ == "__main__":
    # NOTE: ForestGapModel.forward is abstract; this implements the minimal concrete
    # segmentation head implied by the base-class contract (channel projection + sigmoid).
    key = jax.random.PRNGKey(0)
    kx, kp, kx2 = jax.random.split(key, 3)

    B, Cin, Cout, H, W = 2, 4, 1, 16, 16
    x = jax.random.normal(kx, (B, Cin, H, W), jnp.float32)
    weight, bias = init_params(kp, Cin, Cout)

    out = jax.block_until_ready(forest_gap_forward(x, weight, bias))
    ref = _reference(x, weight, bias)
    assert out.shape == (B, Cout, H, W)
    # Exact (non-approx) sigmoid via tanh -> tight tolerance.
    assert jnp.allclose(out, ref, atol=1e-5, rtol=1e-5), "mismatch vs reference"

    # Also exercise the non-128-divisible spatial path (small padding + slice-back).
    H2, W2 = 30, 30
    x2 = jax.random.normal(kx2, (B, Cin, H2, W2), jnp.float32)
    out2 = jax.block_until_ready(forest_gap_forward(x2, weight, bias))
    ref2 = _reference(x2, weight, bias)
    assert out2.shape == (B, Cout, H2, W2)
    assert jnp.allclose(out2, ref2, atol=1e-5, rtol=1e-5), "mismatch vs reference (padded path)"

    print("KERNEL_OK")
</pallas_src>

<mosaic_0001>
module attributes {stable_mosaic.version = 11 : i64} {
  func.func @kernel(%arg0: i32, %arg1: i32, %arg2: memref<1x4x1x256xf32, #tpu.memory_space<vmem>>, %arg3: memref<1x4xf32, #tpu.memory_space<smem>>, %arg4: memref<1xf32, #tpu.memory_space<smem>>, %arg5: memref<1x1x1x256xf32, #tpu.memory_space<vmem>>) attributes {dimension_semantics = [#tpu.dimension_semantics<parallel>, #tpu.dimension_semantics<parallel>], iteration_bounds = array<i64: 2, 1>, scalar_prefetch = 0 : i64, scratch_operands = 0 : i64, tpu.core_type = #tpu.core_type<tc>, window_params = [{transform_indices = @transform_0, window_bounds = array<i64: 1, 4, 1, 256>}, {transform_indices = @transform_1, window_bounds = array<i64: 1, 4>}, {transform_indices = @transform_2, window_bounds = array<i64: 1>}, {transform_indices = @transform_3, window_bounds = array<i64: 1, 1, 1, 256>}]} {
    %c0 = arith.constant 0 : index
    %c0_0 = arith.constant 0 : index
    %0 = memref.load %arg3[%c0, %c0_0] : memref<1x4xf32, #tpu.memory_space<smem>>
    %c0_1 = arith.constant 0 : index
    %c0_2 = arith.constant 0 : index
    %c0_3 = arith.constant 0 : index
    %c0_4 = arith.constant 0 : index
    %1 = vector.load %arg2[%c0_1, %c0_2, %c0_3, %c0_4] : memref<1x4x1x256xf32, #tpu.memory_space<vmem>>, vector<1x1x1x256xf32>
    %2 = vector.shape_cast %1 : vector<1x1x1x256xf32> to vector<1x256xf32>
    %3 = vector.broadcast %0 : f32 to vector<1x256xf32>
    %4 = arith.mulf %3, %2 : vector<1x256xf32>
    %c0_5 = arith.constant 0 : index
    %5 = memref.load %arg4[%c0_5] : memref<1xf32, #tpu.memory_space<smem>>
    %6 = vector.broadcast %5 : f32 to vector<1x256xf32>
    %7 = arith.addf %4, %6 : vector<1x256xf32>
    %c0_6 = arith.constant 0 : index
    %c1 = arith.constant 1 : index
    %8 = memref.load %arg3[%c0_6, %c1] : memref<1x4xf32, #tpu.memory_space<smem>>
    %c0_7 = arith.constant 0 : index
    %c1_8 = arith.constant 1 : index
    %c0_9 = arith.constant 0 : index
    %c0_10 = arith.constant 0 : index
    %9 = vector.load %arg2[%c0_7, %c1_8, %c0_9, %c0_10] : memref<1x4x1x256xf32, #tpu.memory_space<vmem>>, vector<1x1x1x256xf32>
    %10 = vector.shape_cast %9 : vector<1x1x1x256xf32> to vector<1x256xf32>
    %11 = vector.broadcast %8 : f32 to vector<1x256xf32>
    %12 = arith.mulf %11, %10 : vector<1x256xf32>
    %13 = arith.addf %7, %12 : vector<1x256xf32>
    %c0_11 = arith.constant 0 : index
    %c2 = arith.constant 2 : index
    %14 = memref.load %arg3[%c0_11, %c2] : memref<1x4xf32, #tpu.memory_space<smem>>
    %c0_12 = arith.constant 0 : index
    %c2_13 = arith.constant 2 : index
    %c0_14 = arith.constant 0 : index
    %c0_15 = arith.constant 0 : index
    %15 = vector.load %arg2[%c0_12, %c2_13, %c0_14, %c0_15] : memref<1x4x1x256xf32, #tpu.memory_space<vmem>>, vector<1x1x1x256xf32>
    %16 = vector.shape_cast %15 : vector<1x1x1x256xf32> to vector<1x256xf32>
    %17 = vector.broadcast %14 : f32 to vector<1x256xf32>
    %18 = arith.mulf %17, %16 : vector<1x256xf32>
    %19 = arith.addf %13, %18 : vector<1x256xf32>
    %c0_16 = arith.constant 0 : index
    %c3 = arith.constant 3 : index
    %20 = memref.load %arg3[%c0_16, %c3] : memref<1x4xf32, #tpu.memory_space<smem>>
    %c0_17 = arith.constant 0 : index
    %c3_18 = arith.constant 3 : index
    %c0_19 = arith.constant 0 : index
    %c0_20 = arith.constant 0 : index
    %21 = vector.load %arg2[%c0_17, %c3_18, %c0_19, %c0_20] : memref<1x4x1x256xf32, #tpu.memory_space<vmem>>, vector<1x1x1x256xf32>
    %22 = vector.shape_cast %21 : vector<1x1x1x256xf32> to vector<1x256xf32>
    %23 = vector.broadcast %20 : f32 to vector<1x256xf32>
    %24 = arith.mulf %23, %22 : vector<1x256xf32>
    %25 = arith.addf %19, %24 : vector<1x256xf32>
    %cst = arith.constant 5.000000e-01 : f32
    %26 = vector.broadcast %cst : f32 to vector<1x256xf32>
    %27 = arith.mulf %26, %25 : vector<1x256xf32>
    %28 = math.tanh %27 : vector<1x256xf32>
    %cst_21 = arith.constant 5.000000e-01 : f32
    %29 = vector.broadcast %cst_21 : f32 to vector<1x256xf32>
    %30 = arith.mulf %29, %28 : vector<1x256xf32>
    %cst_22 = arith.constant 5.000000e-01 : f32
    %31 = vector.broadcast %cst_22 : f32 to vector<1x256xf32>
    %32 = arith.addf %30, %31 : vector<1x256xf32>
    %c0_23 = arith.constant 0 : index
    %c0_24 = arith.constant 0 : index
    %c0_25 = arith.constant 0 : index
    %c0_26 = arith.constant 0 : index
    %33 = vector.load %arg5[%c0_23, %c0_24, %c0_25, %c0_26] : memref<1x1x1x256xf32, #tpu.memory_space<vmem>>, vector<1x1x1x256xf32>
    %34 = vector.shape_cast %33 : vector<1x1x1x256xf32> to vector<1x256xf32>
    %35 = vector.shape_cast %32 : vector<1x256xf32> to vector<1x1x1x256xf32>
    tpu.vector_store %arg5[%c0_23, %c0_24, %c0_25, %c0_26], %35 {strides = array<i32>} : memref<1x1x1x256xf32, #tpu.memory_space<vmem>>, vector<1x1x1x256xf32>,
    return
  }
  func.func @transform_0(%arg0: i32, %arg1: i32) -> (i32, i32, i32, i32) {
    %c0_i32 = arith.constant 0 : i32
    %c0_i32_0 = arith.constant 0 : i32
    %c0_i32_1 = arith.constant 0 : i32
    return %arg0, %c0_i32, %arg1, %c0_i32_0 : i32, i32, i32, i32
  }
  func.func @transform_1(%arg0: i32, %arg1: i32) -> (i32, i32) {
    %c0_i32 = arith.constant 0 : i32
    %c0_i32_0 = arith.constant 0 : i32
    %c0_i32_1 = arith.constant 0 : i32
    return %c0_i32, %c0_i32_0 : i32, i32
  }
  func.func @transform_2(%arg0: i32, %arg1: i32) -> i32 {
    %c0_i32 = arith.constant 0 : i32
    %c0_i32_0 = arith.constant 0 : i32
    return %c0_i32 : i32
  }
  func.func @transform_3(%arg0: i32, %arg1: i32) -> (i32, i32, i32, i32) {
    %c0_i32 = arith.constant 0 : i32
    %c0_i32_0 = arith.constant 0 : i32
    %c0_i32_1 = arith.constant 0 : i32
    return %arg0, %c0_i32, %arg1, %c0_i32_0 : i32, i32, i32, i32
  }
}

</mosaic_0001>

<bundles_post_ra>
// kernel: tpu_custom_call.1
= control target key start
LH: loop header
LB: loop body
LE: loop exit
PB: predicated region body
PF: predicated region fallthrough
CT: control target
= control target key end

     0   :  { %s843_s0 = inlined_call_operand.hbm [shape: f32[2,4,1,256], index: 0, kind: input, shape index: {}]   ;;  %s844_s1 = inlined_call_operand.vmem [shape: f32[1,4], index: 1, kind: input, shape index: {}]   ;;  %s845_s2 = inlined_call_operand.<no memory space> [shape: f32[1], index: 2, kind: input, shape index: {}]   ;;  %s846_s3 = inlined_call_operand.hbm [shape: f32[2,1,1,256], index: 3, kind: output, shape index: {}]  }
   0x1   :  { %8 = sst [smem:[#allocation2]] %s845_s2 }
   0x2   :  { %9 = vsyncpa [#allocation4], 0 }
   0x3   :  { %11 = vsyncpa [#allocation4 + $0x1], 0 }
   0x4   :  { %12 = vsyncpa [#allocation6], 0 }
   0x5   :  { %13 = vsyncpa [#allocation5], 0 }
   0x6   :  { %15 = vsyncpa [#allocation5 + $0x1], 0  ;;  %s632_s14 = smov 0   ;;  %s634_s15 = smov 0  }
   0x7   :  { %s636_s16 = smov 0   ;;  %s638_s17 = smov 0  }
   0x8   :  { %s640_s18 = smov 0   ;;  %s642_s19 = smov 0  }
   0x9 LB: > { %s369_s2 = sadd.s32 4294967295, %s602_s19   ;;  %s370_s20 = sadd.s32 4294967294, %s602_s19   ;;  %s602_s19 = sphi %s642_s19, %s21_s19   ;;  %s598_s18 = sphi %s640_s18, %s869_s18   ;;  %s594_s17 = sphi %s638_s17, %s868_s17   ;;  %s590_s16 = sphi %s636_s16, %s867_s16   ;;  %s586_s15 = sphi %s634_s15, %s866_s15   ;;  %s582_s14 = sphi %s632_s14, %s865_s14  }
   0xa   : > { %s42_s21 = sadd.s32 1, %s590_s16  ;;  %p49_p0 = scmp.ne.s32.totalorder %s590_s16, %s586_s15 }
   0xb   : > { %p50_p1 = scmp.eq.s32.totalorder %s602_s19, 0  ;;  %p55_p2 = scmp.ne.s32.totalorder %s586_s15, %s582_s14 }
   0xc   : > { %p670_p3 = scmp.eq.s32.totalorder %s369_s2, 0  ;;  %p123_p4 = scmp.eq.s32.totalorder %s369_s2, 1 }
   0xd   : > { %p674_p5 = por %p50_p1, %p49_p0  ;;  %p129_p6 = scmp.eq.s32.totalorder %s370_s20, 1 }
   0xe   : > { %s851_s22 = scalar_select %p670_p3, 1, 0 }
   0xf   : > { %p680_p7 = por %p670_p3, %p55_p2  ;;  %p684_p8 = por %p123_p4, %p49_p0 }
  0x10   : > { %p688_p9 = por %p129_p6, %p55_p2  ;;  %p371_p10 = scmp.ge.s32.totalorder %s602_s19, 1 }
  0x11   : > { %s853_s24 = scalar_select %p680_p7, 1, 0 }
  0x12   : > { %s854_s25 = scalar_select %p684_p8, 1, 0 }
  0x13   : > { %s855_s26 = scalar_select %p688_p9, 1, 0 }
  0x14   : > { %p136_p11 = scmp.lt.s32.totalorder %s602_s19, 3  ;;  %s149_s29 = sshll.u32 %s844_s1, 4  ;;  %s150_s29 = int_to_ptr.vmem [resolvable:$true] %s149_s29 }
  0x15   : > { %p415_p0 = scmp.lt.s32.totalorder %s602_s19, 2  ;;  %s33_s6 = sadd.s32 1, %s598_s18 }
  0x16   : > { %p697_p12 = pnand %p371_p10, %p136_p11  ;;  %p718_p6 = scmp.ge.s32.totalorder %s33_s6, 2 }
  0x17   : > { %p707_p2 = pnand %p415_p0, %p674_p5  ;;  %s163_s8 = sand.u32 1, %s590_s16  }
  0x18   : > { %p402_p1 = pneg %p697_p12  ;;  %s471_s9 = scalar_lea.vmem %s150_s29, 16 }
  0x19   : > { %p472_p10 = scmp.ne.s32.totalorder %s150_s29, %s471_s9  ;;  %p479_p13 = scmp.lt.s32.totalorder %s150_s29, %s150_s29 }
  0x1a   : > { %p713_p4 = pnand %p402_p1, %p670_p3  ;;  %p480_p9 = scmp.lt.s32.totalorder %s471_s9, %s471_s9 }
  0x1c   : > { %p473_p11 = pneg %p713_p4  ;;  %p481_p8 = por %p480_p9, %p479_p13 }
  0x1e   : > { %p474_p5 = pnand %p473_p11, %p472_p10 }
  0x20   : > { %p475_p0 = pneg %p474_p5 }
  0x22   : > { %p482_p1 = pnand %p481_p8, %p475_p0 }
  0x24   : > { %485 = shalt.err (!%p482_p1)
}
  0x25   : > { %s604_s10 = smov [#allocation7]   ;;  %s871_s6 = smov (%p718_p6, %s33_s6), 0 }
  0x26   : > { %405 = dma.vmem_to_smem (!%p713_p4), %s150_s29, 16, %s604_s10, [#allocation6]  }
  0x27   : > { %s374_s11 = sshll.u32 %s163_s8, 3  ;;  %s37_s12 = ssub.s32 %s598_s18, %s871_s6 }
  0x28   : > { %p40_p9 = scmp.eq.s32.totalorder %s37_s12, 0  ;;  %s392_s13 = sshll.u32 %s598_s18, 7 }
  0x29   : > { %s737_s23 = scalar_lea.hbm %s843_s0, %s392_s13  ;;  %s167_s27 = scalar_lea.vmem [#allocation3], %s374_s11 }
  0x2a   : > { %s176_s28 = sshll.u32 %s167_s27, 4  ;;  %s746_s5 = scalar_lea.sflag [#allocation4], %s163_s8  ;;  %s744_s28 = int_to_ptr.vmem [resolvable:$true] %s176_s28 }
  0x2b   : > { %s742_s29 = scalar_select %p40_p9, %s590_s16, %s42_s21  }
  0x2c   : > { %s486_s7 = scalar_lea.hbm %s737_s23, 128  ;;  %p488_p13 = pneg %p707_p2 }
  0x2d   : > { %p487_p8 = scmp.ne.s32.totalorder %s737_s23, %s486_s7  ;;  %s491_s11 = scalar_lea.hbm %s843_s0, 256 }
  0x2e   : > { %p492_p10 = scmp.lt.u32.totalorder %s737_s23, %s843_s0  ;;  %p493_p11 = scmp.lt.u32.totalorder %s491_s11, %s486_s7 }
  0x2f   : > { %p489_p4 = pnand %p488_p13, %p487_p8  ;;  %p495_p0 = scmp.lt.u32.totalorder %s486_s7, %s737_s23 }
  0x30   : > { %p494_p5 = por %p493_p11, %p492_p10 }
  0x31   : > { %p490_p6 = pneg %p489_p4 }
  0x32   : > { %p496_p1 = por %p495_p0, %p494_p5 }
  0x34   : > { %p497_p9 = pnand %p496_p1, %p490_p6 }
  0x36   : > { %500 = shalt.err (!%p497_p9)
}
  0x37   : > { %s501_s21 = scalar_lea.vmem %s744_s28, 128  ;;  %s605_s8 = smov [#allocation3]  }
  0x38   : > { %p502_p8 = scmp.ne.s32.totalorder %s744_s28, %s501_s21  ;;  %s506_s2 = sshll.u32 %s605_s8, 4  ;;  %s507_s2 = int_to_ptr.vmem [resolvable:$false] %s506_s2 }
  0x39   : > { %s508_s20 = scalar_lea.vmem %s507_s2, 256  ;;  %p509_p7 = scmp.lt.s32.totalorder %s744_s28, %s507_s2 }
  0x3a   : > { %p504_p4 = pnand %p502_p8, %p488_p13  ;;  %p510_p10 = scmp.lt.s32.totalorder %s508_s20, %s501_s21 }
  0x3c   : > { %p505_p3 = pneg %p504_p4  ;;  %p511_p11 = por %p510_p10, %p509_p7 }
  0x3e   : > { %p512_p5 = pnand %p511_p11, %p505_p3 }
  0x40   : > { %515 = shalt.err (!%p512_p5)
}
  0x41   : > { %s606_s27 = smov 32   ;;  %s607_s7 = smov 2  }
  0x42   : > { %409 = dma.hbm_to_vmem [thread:$0]  (!%p707_p2), %s737_s23, 128, %s744_s28, %s746_s5, %s606_s27, %s606_s27, %s607_s7  }
  0x43   : > { %188 = sbr.rel (%p697_p12) target bundleno = 128 (0x80), region = 32  ;;  %s777_s9 = sand.u32 (!%p697_p12), 1, %s586_s15  }
  0x44   : > { %s378_s10 = sshll.u32 (!%p697_p12), %s777_s9, 3  ;;  %s191_s11 = scalar_lea.sflag (!%p697_p12), [#allocation4], %s777_s9 }
  0x45   : > { %s194_s12 = scalar_lea.vmem (!%p697_p12), [#allocation3], %s378_s10  ;;  %p860_p3 = scmp.ne.s32.totalorder (!%p697_p12), %s853_s24, 0 }
  0x4a   : > { %569 = dma.done.wait (%p860_p3), %s191_s11, 128  }
  0x4b   : > { %571 = vsyncadd (%p860_p3), %s191_s11, 4294967168  ;;  %p861_p7 = scmp.ne.s32.totalorder %s851_s22, 0 }
  0x4d   : > { %573 = dma.done.wait (%p861_p7), [#allocation6], 16  }
  0x4e   : > { %575 = vsyncadd (%p861_p7), [#allocation6], 4294967280 }
  0x4f   : > { %203 = sfence }
  0x50   : > { %s222_s30 = sld [smem:[#allocation7]]  ;;  %s381_s23 = sld [smem:[#allocation7 + $0x1]]  ;;  %v223_v0 = vld [vmem:[%s194_s12] sm:$0x3]  ;;  %v382_v2 = vld [vmem:[%s194_s12 + $0x2] sm:$0x3]  ;;  %v251_v18 = vlaneseq }
  0x51   : > { %s226_s4 = sld [smem:[#allocation2]]  ;;  %s383_s28 = sld [smem:[#allocation7 + $0x2]]  ;;  %v384_v3 = vld [vmem:[%s194_s12 + $0x4] sm:$0x3]  ;;  %v386_v8 = vld [vmem:[%s194_s12 + $0x6] sm:$0x3] }
  0x52   : > { %s385_s5 = sld [smem:[#allocation7 + $0x3]]  ;;  %s380_s22 = sshll.u32 %s777_s9, 1  ;;  %vm253_vm0 = vcmp.lt.s32.totalorder %v251_v18, 256 }
  0x53   : > { %s221_s24 = scalar_lea.vmem [#allocation8], %s380_s22  ;;  %s393_s21 = sshll.u32 %s594_s17, 5 }
  0x54   : > { %s273_s13 = sshll.u32 %s221_s24, 4  ;;  %s796_s20 = scalar_lea.hbm %s846_s3, %s393_s21  ;;  %s791_s13 = int_to_ptr.vmem [resolvable:$true] %s273_s13 }
  0x55   : > { %s257_s27 = scalar_lea.sflag [#allocation5], %s777_s9  ;;  %s516_s7 = scalar_lea.vmem %s791_s13, 32 }
  0x56   : > { %v224_v1 = vstv %s222_s30  ;;  %v232_v6 = vstv %s381_s23  ;;  %p517_p12 = scmp.ne.s32.totalorder %s791_s13, %s516_s7  ;;  %p862_p2 = scmp.ne.s32.totalorder %s854_s25, 0 }
  0x57   : > { %v225_v4 = vmul.f32 %v224_v1, %v223_v0  ;;  %v227_v5 = vstv %s226_s4  ;;  %v238_v7 = vstv %s383_s28  ;;  %v233_v10 = vmul.f32 %v382_v2, %v232_v6  ;;  %s608_s17 = smov [#allocation8]  }
  0x58   : > { %v239_v11 = vmul.f32 %v384_v3, %v238_v7  ;;  %v244_v12 = vstv %s385_s5  ;;  %p518_p13 = pnand %p517_p12, %p862_p2  ;;  %s520_s10 = sshll.u32 %s608_s17, 4  ;;  %s521_s10 = int_to_ptr.vmem [resolvable:$false] %s520_s10 }
  0x59   : > { %v228_v9 = vadd.f32 %v227_v5, %v225_v4  ;;  %v245_v14 = vmul.f32 %v386_v8, %v244_v12  ;;  %s522_s11 = scalar_lea.vmem %s521_s10, 64  ;;  %p523_p0 = scmp.lt.s32.totalorder %s791_s13, %s521_s10 }
  0x5a   : > { %p519_p6 = pneg %p518_p13  ;;  %p524_p1 = scmp.lt.s32.totalorder %s522_s11, %s516_s7 }
  0x5b   : > { %v234_v13 = vadd.f32 %v233_v10, %v228_v9 }
  0x5c   : > { %p525_p9 = por %p524_p1, %p523_p0 }
  0x5d   : > { %v240_v15 = vadd.f32 %v239_v11, %v234_v13 }
  0x5e   : > { %p526_p8 = pnand %p525_p9, %p519_p6 }
  0x5f   : > { %v246_v16 = vadd.f32 %v245_v14, %v240_v15 }
  0x61   : > { %v247_v17 = vmul.f32 0.5, %v246_v16 }
  0x63   : > { %469 = vtanh.f32 %v247_v17 }
  0x6d   : > { %v470_v19 = vpop.eup %469 }
  0x6e   : > { %v249_v20 = vmul.f32 0.5, %v470_v19 }
  0x70   : > { %v250_v21 = vadd.f32 0.5, %v249_v20 }
  0x72   : > { %255 = vst.msk [vmem:[%s221_s24] sm:$0x3] %vm253_vm0, %v250_v21 }
  0x73   : > { %529 = shalt.err (!%p526_p8)
}
  0x74   : > { %s530_s9 = scalar_lea.hbm %s796_s20, 32  ;;  %s534_s4 = scalar_lea.hbm %s846_s3, 64 }
  0x75   : > { %p531_p4 = scmp.ne.s32.totalorder %s796_s20, %s530_s9  ;;  %p535_p5 = scmp.lt.u32.totalorder %s796_s20, %s846_s3 }
  0x76   : > { %p536_p3 = scmp.lt.u32.totalorder %s534_s4, %s530_s9  ;;  %p538_p12 = scmp.lt.u32.totalorder %s530_s9, %s796_s20 }
  0x77   : > { %p532_p10 = pnand %p531_p4, %p862_p2 }
  0x78   : > { %p537_p7 = por %p536_p3, %p535_p5 }
  0x79   : > { %p533_p11 = pneg %p532_p10 }
  0x7a   : > { %p539_p13 = por %p538_p12, %p537_p7 }
  0x7c   : > { %p540_p6 = pnand %p539_p13, %p533_p11 }
  0x7e   : > { %543 = shalt.err (!%p540_p6)
}
  0x7f   : > { %400 = dma.vmem_to_hbm [thread:$0]  (%p862_p2), %s791_s13, 32, %s796_s20, %s257_s27  }
  0x80 PF: > { %s285_s5 = sand.u32 1, %s582_s14   ;;  %p863_p0 = scmp.ne.s32.totalorder %s855_s26, 0 }
  0x81   : > { %p864_p1 = scmp.ge.s32.totalorder %s602_s19, 2  ;;  %s286_s22 = scalar_lea.sflag [#allocation5], %s285_s5 }
  0x83   : > { %p411_p9 = pnand %p864_p1, %p863_p0 }
  0x85   : > { %577 = dma.done.wait (!%p411_p9), %s286_s22, 32  }
  0x86   : > { %579 = vsyncadd (!%p411_p9), %s286_s22, 4294967264  ;;  %s21_s19 = sadd.s32 1, %s602_s19   ;;  %s865_s14 = smov %s586_s15 }
  0x87   : > { %p18_p8 = scmp.ge.s32.totalorder %s21_s19, 4   ;;  %s866_s15 = smov %s590_s16 }
  0x88   : > { %s867_s16 = smov %s742_s29  ;;  %s868_s17 = smov %s598_s18 }
  0x89   : > { %s869_s18 = smov %s871_s6  ;;  %20 = sbr.rel (!%p18_p8) target bundleno = 9 (0x9), region = 85 }
  0x90   :  { %291 = vsyncpa [#allocation4], 1 }
  0x91   :  { %293 = vsyncpa [#allocation4 + $0x1], 1 }
  0x92   :  { %294 = vsyncpa [#allocation5], 1 }
  0x93   :  { %296 = vsyncpa [#allocation5 + $0x1], 1 }
  0x94   :  { %297 = vsyncpa [#allocation6], 1 }
  0x95   :  { %299 = vsyncpa [#allocation6 + $0x1], 1 }

</bundles_post_ra>
